<compile_context>
chip_gen: v7x
topology: tpu7x:2x2x1
jax: 0.10.0
libtpu: 0.0.40
codegen_flags: <defaults>
</compile_context>

<pallas_src>
import functools

import jax
import jax.numpy as jnp
from jax import lax
from jax.experimental import pallas as pl
from jax.experimental.pallas import tpu as pltpu


# ---------------------------------------------------------------------------
# Kernel 1: fused transformer encoder block (whole batch, one invocation)
# ---------------------------------------------------------------------------
def _layernorm(x, g, b, eps=1e-5):
    mu = jnp.mean(x, axis=-1, keepdims=True)
    var = jnp.mean(jnp.square(x - mu), axis=-1, keepdims=True)
    return (x - mu) * lax.rsqrt(var + eps) * g + b


def encoder_block_kernel(x_ref, mask_ref,
                         wq_ref, wk_ref, wv_ref, wo_ref,
                         w1_ref, w2_ref,
                         g1_ref, b1_ref, g2_ref, b2_ref,
                         out_ref):
    B, S, D = x_ref.shape
    x = x_ref[...]                          # [B, S, D] bf16
    xf = x.reshape(B * S, D)                # [R, D]  -> every projection sees M=B*S rows
    mask = mask_ref[...]                    # [B, S] f32, 1.0 = keep, 0.0 = pad

    # QKV projections: bf16 MXU inputs, f32 accumulation.
    q = jnp.dot(xf, wq_ref[...], preferred_element_type=jnp.float32)
    k = jnp.dot(xf, wk_ref[...], preferred_element_type=jnp.float32)
    v = jnp.dot(xf, wv_ref[...], preferred_element_type=jnp.float32)

    # Fold 1/sqrt(D) into q ([R, D]) rather than into scores ([B, S, S]).
    q = q * (1.0 / float(D) ** 0.5)

    q3 = q.reshape(B, S, D).astype(jnp.bfloat16)
    k3 = k.reshape(B, S, D).astype(jnp.bfloat16)
    v3 = v.reshape(B, S, D).astype(jnp.bfloat16)

    # scores[b,i,j] = q[b,i,:] . k[b,j,:] -- contract last axes, no K transpose.
    scores = jnp.einsum('bqd,bkd->bqk', q3, k3,
                        preferred_element_type=jnp.float32)          # [B, S, S]
    # attention_mask semantics: masked key positions get a large negative bias.
    # NOTE: a fully-padded key row would produce NaNs; HF avoids that by also
    # masking those rows out of the loss (the loss mask here covers them too).
    scores = scores + (mask[:, None, :] - 1.0) * 1e9

    m = jnp.max(scores, axis=-1, keepdims=True)
    p = jnp.exp(scores - m)
    denom = jnp.sum(p, axis=-1, keepdims=True)
    p = p * pl.reciprocal(denom, approx=True)                        # EUP divide

    attn = jnp.einsum('bqk,bkd->bqd', p.astype(jnp.bfloat16), v3,
                      preferred_element_type=jnp.float32)            # [B, S, D]
    attn = attn.reshape(B * S, D).astype(jnp.bfloat16)
    attn = jnp.dot(attn, wo_ref[...], preferred_element_type=jnp.float32)

    h = _layernorm(xf.astype(jnp.float32) + attn, g1_ref[...], b1_ref[...])

    ffn = jnp.dot(h.astype(jnp.bfloat16), w1_ref[...],
                  preferred_element_type=jnp.float32)
    ffn = jnp.maximum(ffn, 0.0).astype(jnp.bfloat16)
    ffn = jnp.dot(ffn, w2_ref[...], preferred_element_type=jnp.float32)

    out = _layernorm(h + ffn, g2_ref[...], b2_ref[...])
    out_ref[...] = out.reshape(B, S, D).astype(out_ref.dtype)


# ---------------------------------------------------------------------------
# Kernel 2: tied LM head + log-softmax + masked NLL, tiled over row blocks
# ---------------------------------------------------------------------------
def lm_head_loss_kernel(h_ref, emb_ref, labels_ref, logits_ref, sums_ref,
                        *, pad_id):
    i = pl.program_id(0)

    @pl.when(i == 0)
    def _init():
        sums_ref[...] = jnp.zeros_like(sums_ref)

    h = h_ref[...]                # [TM, D] bf16
    emb = emb_ref[...]            # [V, D]  bf16 (tied embedding = LM head)
    labels = labels_ref[...]      # [TM, 1] int32

    # logits[t, v] = h[t,:] . emb[v,:] -- contract last axes of BOTH operands,
    # so the (potentially huge) embedding matrix is never transposed/relayouted.
    logits = lax.dot_general(h, emb, (((1,), (1,)), ((), ())),
                             preferred_element_type=jnp.float32)     # [TM, V]
    logits_ref[...] = logits      # the only [*, V] tensor written back to HBM

    # Numerically-stable log-sum-exp over vocab, kept in f32.
    m = jnp.max(logits, axis=-1, keepdims=True)
    lse = m + jnp.log(jnp.sum(jnp.exp(logits - m), axis=-1, keepdims=True))

    # Label logit via masked select; NLL = lse - logit[label].
    # TODO(synk): at realistic vocab (~50k) this kernel should add a vocab grid
    # axis with an online (running max/sum) log-sum-exp instead of a full-V tile.
    tm, v = logits.shape
    vocab_ids = lax.broadcasted_iota(jnp.int32, (tm, v), 1)
    label_logit = jnp.sum(jnp.where(vocab_ids == labels, logits, 0.0),
                          axis=-1, keepdims=True)                    # [TM, 1]
    nll = lse - label_logit

    # Masked cross-entropy partial sums, accumulated in a lane-dense slab
    # (lane 0 = sum of nll over valid tokens, lane 1 = number of valid tokens).
    # TODO(synk): HF ignores label==-100; we ignore padding_idx instead.
    valid = (labels != pad_id).astype(jnp.float32)
    num = jnp.sum(nll * valid)
    den = jnp.sum(valid)
    lane = lax.broadcasted_iota(jnp.int32, sums_ref.shape, 1)
    sums_ref[...] += jnp.where(lane == 0, num,
                               jnp.where(lane == 1, den, 0.0))


# ---------------------------------------------------------------------------
# Wrappers
# ---------------------------------------------------------------------------
def transformer_block(x, mask_f, params):
    B, S, D = x.shape
    vmem = lambda: pl.BlockSpec(memory_space=pltpu.MemorySpace.VMEM)
    return pl.pallas_call(
        encoder_block_kernel,
        out_shape=jax.ShapeDtypeStruct((B, S, D), jnp.bfloat16),
        in_specs=[vmem() for _ in range(12)],
        out_specs=vmem(),
    )(x, mask_f,
      params["wq"], params["wk"], params["wv"], params["wo"],
      params["w1"], params["w2"],
      params["g1"], params["b1"], params["g2"], params["b2"])


def lm_head_and_loss(h_flat, emb, labels, pad_id):
    """h_flat: [R, D] bf16, emb: [V, D] bf16, labels: [R, 1] int32."""
    R, D = h_flat.shape
    V = emb.shape[0]

    # Row tile: fill the MXU (256 rows) when possible, else take all rows.
    tm = 256 if R >= 256 else max(8, R)
    pad = (-R) % tm
    if pad:
        h_flat = jnp.concatenate(
            [h_flat, jnp.zeros((pad, D), h_flat.dtype)], axis=0)
        labels = jnp.concatenate(
            [labels, jnp.full((pad, 1), pad_id, labels.dtype)], axis=0)
    Rp = R + pad
    nb = Rp // tm

    kernel = functools.partial(lm_head_loss_kernel, pad_id=pad_id)
    logits, sums = pl.pallas_call(
        kernel,
        out_shape=(jax.ShapeDtypeStruct((Rp, V), jnp.float32),
                   jax.ShapeDtypeStruct((1, 128), jnp.float32)),
        grid_spec=pltpu.PrefetchScalarGridSpec(
            num_scalar_prefetch=0,
            grid=(nb,),
            in_specs=[
                pl.BlockSpec((tm, D), lambda i: (i, 0)),   # hidden rows
                pl.BlockSpec((V, D), lambda i: (0, 0)),    # tied embedding
                pl.BlockSpec((tm, 1), lambda i: (i, 0)),   # labels per block
            ],
            out_specs=(pl.BlockSpec((tm, V), lambda i: (i, 0)),   # logits
                       pl.BlockSpec((1, 128), lambda i: (0, 0))), # loss sums
        ),
        # The loss-sums output is revisited across the row axis -> arbitrary.
        compiler_params=pltpu.CompilerParams(
            dimension_semantics=("arbitrary",)),
    )(h_flat, emb, labels)

    loss = sums[0, 0] / jnp.maximum(sums[0, 1], 1.0)
    return logits[:R], loss


class PallasGenerator:
    """Synthetic stand-in for Generator (tiny conditional LM, eval forward)."""

    def __init__(self, vocab_size=256, d_model=128, d_ff=256,
                 max_decode_len=16, dropout=0.0, pad_token_id=0, seed=0):
        self.vocab_size = vocab_size
        self.max_decode_len = max_decode_len
        self.padding_idx = pad_token_id
        # dropout is a no-op in the eval-mode forward; kept for signature parity.
        ks = jax.random.split(jax.random.PRNGKey(seed), 7)

        def n(k, shp, s):
            return (jax.random.normal(k, shp, jnp.float32) * s).astype(jnp.bfloat16)

        D, F, V = d_model, d_ff, vocab_size
        self.emb = n(ks[0], (V, D), 0.02)              # token emb (tied LM head)
        self.params = dict(
            wq=n(ks[1], (D, D), D ** -0.5),
            wk=n(ks[2], (D, D), D ** -0.5),
            wv=n(ks[3], (D, D), D ** -0.5),
            wo=n(ks[4], (D, D), D ** -0.5),
            w1=n(ks[5], (D, F), D ** -0.5),
            w2=n(ks[6], (F, D), F ** -0.5),
            g1=jnp.ones((1, D), jnp.float32),
            b1=jnp.zeros((1, D), jnp.float32),
            g2=jnp.ones((1, D), jnp.float32),
            b2=jnp.zeros((1, D), jnp.float32),
        )

    def forward(self, src_input, src_mask, tgt_output):
        # mirrors: src_mask = src_mask.type(src_input.type()); model(...)
        mask_f = src_mask.astype(jnp.float32)
        x = jnp.take(self.emb, src_input, axis=0)       # glue: embedding lookup
        h = transformer_block(x, mask_f, self.params)   # Pallas kernel 1
        B, S, D = h.shape
        h_flat = h.reshape(B * S, D)
        labels = tgt_output.astype(jnp.int32).reshape(B * S, 1)
        logits_flat, loss = lm_head_and_loss(h_flat, self.emb, labels,
                                             pad_id=self.padding_idx)  # kernel 2
        logits = logits_flat.reshape(B, S, self.vocab_size)
        # (the original HF output also carries attentions/hidden_states; the
        #  nn.LogSoftmax attribute is unused in the reference forward)
        return {"loss": loss, "logits": logits}


if __name__ == "__main__":
    B, S, V = 2, 8, 256
    key = jax.random.PRNGKey(0)
    k1, k2 = jax.random.split(key)
    src_input = jax.random.randint(k1, (B, S), 1, V, dtype=jnp.int32)
    tgt_output = jax.random.randint(k2, (B, S), 1, V, dtype=jnp.int32)
    src_mask = jnp.ones((B, S), jnp.int32).at[:, -2:].set(0)   # pad last 2 keys

    gen = PallasGenerator(vocab_size=V, d_model=128, d_ff=256,
                          max_decode_len=16, dropout=0.1, pad_token_id=0)
    out = gen.forward(src_input, src_mask, tgt_output)
    jax.block_until_ready(out)
    assert out["logits"].shape == (B, S, V)
    assert out["loss"].shape == ()
    assert bool(jnp.isfinite(out["loss"]))
    print("KERNEL_OK")
</pallas_src>

<mosaic_0001>
module attributes {stable_mosaic.version = 11 : i64} {
  func.func @encoder_block_kernel(%arg0: memref<2x8x128xbf16, #tpu.memory_space<vmem>>, %arg1: memref<2x8xf32, #tpu.memory_space<vmem>>, %arg2: memref<128x128xbf16, #tpu.memory_space<vmem>>, %arg3: memref<128x128xbf16, #tpu.memory_space<vmem>>, %arg4: memref<128x128xbf16, #tpu.memory_space<vmem>>, %arg5: memref<128x128xbf16, #tpu.memory_space<vmem>>, %arg6: memref<128x256xbf16, #tpu.memory_space<vmem>>, %arg7: memref<256x128xbf16, #tpu.memory_space<vmem>>, %arg8: memref<1x128xf32, #tpu.memory_space<vmem>>, %arg9: memref<1x128xf32, #tpu.memory_space<vmem>>, %arg10: memref<1x128xf32, #tpu.memory_space<vmem>>, %arg11: memref<1x128xf32, #tpu.memory_space<vmem>>, %arg12: memref<2x8x128xbf16, #tpu.memory_space<vmem>>) attributes {dimension_semantics = [], scalar_prefetch = 0 : i64, scratch_operands = 0 : i64, tpu.core_type = #tpu.core_type<tc>} {
    %c0 = arith.constant 0 : index
    %c0_0 = arith.constant 0 : index
    %c0_1 = arith.constant 0 : index
    %0 = vector.load %arg0[%c0, %c0_0, %c0_1] : memref<2x8x128xbf16, #tpu.memory_space<vmem>>, vector<2x8x128xbf16>
    %1 = vector.shape_cast %0 : vector<2x8x128xbf16> to vector<16x128xbf16>
    %c0_2 = arith.constant 0 : index
    %c0_3 = arith.constant 0 : index
    %2 = vector.load %arg1[%c0_2, %c0_3] : memref<2x8xf32, #tpu.memory_space<vmem>>, vector<2x8xf32>
    %c0_4 = arith.constant 0 : index
    %c0_5 = arith.constant 0 : index
    %3 = vector.load %arg2[%c0_4, %c0_5] : memref<128x128xbf16, #tpu.memory_space<vmem>>, vector<128x128xbf16>
    %cst = arith.constant dense<0.000000e+00> : vector<16x128xf32>
    %4 = tpu.matmul %1, %3, %cst {dimension_numbers = #tpu.dot_dimension_numbers<[1], [0], [0], [1], [0, 0, 1, 1], [], []>} : vector<16x128xbf16>, vector<128x128xbf16>, vector<16x128xf32> -> vector<16x128xf32>
    %c0_6 = arith.constant 0 : index
    %c0_7 = arith.constant 0 : index
    %5 = vector.load %arg3[%c0_6, %c0_7] : memref<128x128xbf16, #tpu.memory_space<vmem>>, vector<128x128xbf16>
    %cst_8 = arith.constant dense<0.000000e+00> : vector<16x128xf32>
    %6 = tpu.matmul %1, %5, %cst_8 {dimension_numbers = #tpu.dot_dimension_numbers<[1], [0], [0], [1], [0, 0, 1, 1], [], []>} : vector<16x128xbf16>, vector<128x128xbf16>, vector<16x128xf32> -> vector<16x128xf32>
    %c0_9 = arith.constant 0 : index
    %c0_10 = arith.constant 0 : index
    %7 = vector.load %arg4[%c0_9, %c0_10] : memref<128x128xbf16, #tpu.memory_space<vmem>>, vector<128x128xbf16>
    %cst_11 = arith.constant dense<0.000000e+00> : vector<16x128xf32>
    %8 = tpu.matmul %1, %7, %cst_11 {dimension_numbers = #tpu.dot_dimension_numbers<[1], [0], [0], [1], [0, 0, 1, 1], [], []>} : vector<16x128xbf16>, vector<128x128xbf16>, vector<16x128xf32> -> vector<16x128xf32>
    %cst_12 = arith.constant 0.0883883461 : f32
    %9 = vector.broadcast %cst_12 : f32 to vector<16x128xf32>
    %10 = arith.mulf %4, %9 : vector<16x128xf32>
    %11 = vector.shape_cast %10 : vector<16x128xf32> to vector<2x8x128xf32>
    %12 = arith.truncf %11 : vector<2x8x128xf32> to vector<2x8x128xbf16>
    %13 = vector.shape_cast %6 : vector<16x128xf32> to vector<2x8x128xf32>
    %14 = arith.truncf %13 : vector<2x8x128xf32> to vector<2x8x128xbf16>
    %15 = vector.shape_cast %8 : vector<16x128xf32> to vector<2x8x128xf32>
    %16 = arith.truncf %15 : vector<2x8x128xf32> to vector<2x8x128xbf16>
    "tpu.trace_start"() <{level = 10 : i32, message = "bqd,bkd->bqk"}> : () -> ()
    %cst_13 = arith.constant dense<0.000000e+00> : vector<2x8x8xf32>
    %17 = tpu.matmul %12, %14, %cst_13 {dimension_numbers = #tpu.dot_dimension_numbers<[2], [2], [1], [1], [0, 0, 0, 1, 1, 1], [0], [0]>} : vector<2x8x128xbf16>, vector<2x8x128xbf16>, vector<2x8x8xf32> -> vector<2x8x8xf32>
    "tpu.trace_stop"() : () -> ()
    %18 = vector.shape_cast %2 : vector<2x8xf32> to vector<2x1x8xf32>
    %cst_14 = arith.constant 1.000000e+00 : f32
    %19 = vector.broadcast %cst_14 : f32 to vector<2x1x8xf32>
    %20 = arith.subf %18, %19 : vector<2x1x8xf32>
    %cst_15 = arith.constant 1.000000e+09 : f32
    %21 = vector.broadcast %cst_15 : f32 to vector<2x1x8xf32>
    %22 = arith.mulf %20, %21 : vector<2x1x8xf32>
    %23 = vector.broadcast %22 : vector<2x1x8xf32> to vector<2x8x8xf32>
    %24 = arith.addf %17, %23 : vector<2x8x8xf32>
    %cst_16 = arith.constant dense<0xFF800000> : vector<2x8xf32>
    %25 = vector.multi_reduction <maximumf>, %24, %cst_16 [2] : vector<2x8x8xf32> to vector<2x8xf32>
    %26 = vector.shape_cast %25 : vector<2x8xf32> to vector<2x8x1xf32>
    %27 = vector.broadcast %26 : vector<2x8x1xf32> to vector<2x8x8xf32>
    %28 = arith.subf %24, %27 : vector<2x8x8xf32>
    %29 = math.exp %28 : vector<2x8x8xf32>
    %cst_17 = arith.constant dense<0.000000e+00> : vector<2x8xf32>
    %30 = vector.multi_reduction <add>, %29, %cst_17 [2] : vector<2x8x8xf32> to vector<2x8xf32>
    %31 = vector.shape_cast %30 : vector<2x8xf32> to vector<2x8x1xf32>
    %32 = tpu.reciprocal %31 {approx = true} : vector<2x8x1xf32> -> vector<2x8x1xf32>
    %33 = vector.broadcast %32 : vector<2x8x1xf32> to vector<2x8x8xf32>
    %34 = arith.mulf %29, %33 : vector<2x8x8xf32>
    %35 = arith.truncf %34 : vector<2x8x8xf32> to vector<2x8x8xbf16>
    "tpu.trace_start"() <{level = 10 : i32, message = "bqk,bkd->bqd"}> : () -> ()
    %cst_18 = arith.constant dense<0.000000e+00> : vector<2x8x128xf32>
    %36 = tpu.matmul %35, %16, %cst_18 {dimension_numbers = #tpu.dot_dimension_numbers<[2], [1], [1], [2], [0, 0, 0, 1, 1, 2], [0], [0]>} : vector<2x8x8xbf16>, vector<2x8x128xbf16>, vector<2x8x128xf32> -> vector<2x8x128xf32>
    "tpu.trace_stop"() : () -> ()
    %37 = vector.shape_cast %36 : vector<2x8x128xf32> to vector<16x128xf32>
    %38 = arith.truncf %37 : vector<16x128xf32> to vector<16x128xbf16>
    %c0_19 = arith.constant 0 : index
    %c0_20 = arith.constant 0 : index
    %39 = vector.load %arg5[%c0_19, %c0_20] : memref<128x128xbf16, #tpu.memory_space<vmem>>, vector<128x128xbf16>
    %cst_21 = arith.constant dense<0.000000e+00> : vector<16x128xf32>
    %40 = tpu.matmul %38, %39, %cst_21 {dimension_numbers = #tpu.dot_dimension_numbers<[1], [0], [0], [1], [0, 0, 1, 1], [], []>} : vector<16x128xbf16>, vector<128x128xbf16>, vector<16x128xf32> -> vector<16x128xf32>
    %41 = arith.extf %1 : vector<16x128xbf16> to vector<16x128xf32>
    %42 = arith.addf %41, %40 : vector<16x128xf32>
    %c0_22 = arith.constant 0 : index
    %c0_23 = arith.constant 0 : index
    %43 = vector.load %arg8[%c0_22, %c0_23] : memref<1x128xf32, #tpu.memory_space<vmem>>, vector<1x128xf32>
    %c0_24 = arith.constant 0 : index
    %c0_25 = arith.constant 0 : index
    %44 = vector.load %arg9[%c0_24, %c0_25] : memref<1x128xf32, #tpu.memory_space<vmem>>, vector<1x128xf32>
    %cst_26 = arith.constant dense<0.000000e+00> : vector<16xf32>
    %45 = vector.multi_reduction <add>, %42, %cst_26 [1] : vector<16x128xf32> to vector<16xf32>
    %46 = vector.shape_cast %45 : vector<16xf32> to vector<16x1xf32>
    %cst_27 = arith.constant 1.280000e+02 : f32
    %47 = vector.broadcast %cst_27 : f32 to vector<16x1xf32>
    %48 = arith.divf %46, %47 : vector<16x1xf32>
    %49 = vector.broadcast %48 : vector<16x1xf32> to vector<16x128xf32>
    %50 = arith.subf %42, %49 : vector<16x128xf32>
    %51 = arith.mulf %50, %50 : vector<16x128xf32>
    %cst_28 = arith.constant dense<0.000000e+00> : vector<16xf32>
    %52 = vector.multi_reduction <add>, %51, %cst_28 [1] : vector<16x128xf32> to vector<16xf32>
    %53 = vector.shape_cast %52 : vector<16xf32> to vector<16x1xf32>
    %cst_29 = arith.constant 1.280000e+02 : f32
    %54 = vector.broadcast %cst_29 : f32 to vector<16x1xf32>
    %55 = arith.divf %53, %54 : vector<16x1xf32>
    %56 = vector.broadcast %48 : vector<16x1xf32> to vector<16x128xf32>
    %57 = arith.subf %42, %56 : vector<16x128xf32>
    %cst_30 = arith.constant 9.99999974E-6 : f32
    %58 = vector.broadcast %cst_30 : f32 to vector<16x1xf32>
    %59 = arith.addf %55, %58 : vector<16x1xf32>
    %60 = math.rsqrt %59 : vector<16x1xf32>
    %61 = vector.broadcast %60 : vector<16x1xf32> to vector<16x128xf32>
    %62 = arith.mulf %57, %61 : vector<16x128xf32>
    %63 = vector.broadcast %43 : vector<1x128xf32> to vector<16x128xf32>
    %64 = arith.mulf %62, %63 : vector<16x128xf32>
    %65 = vector.broadcast %44 : vector<1x128xf32> to vector<16x128xf32>
    %66 = arith.addf %64, %65 : vector<16x128xf32>
    %67 = arith.truncf %66 : vector<16x128xf32> to vector<16x128xbf16>
    %c0_31 = arith.constant 0 : index
    %c0_32 = arith.constant 0 : index
    %68 = vector.load %arg6[%c0_31, %c0_32] : memref<128x256xbf16, #tpu.memory_space<vmem>>, vector<128x256xbf16>
    %cst_33 = arith.constant dense<0.000000e+00> : vector<16x256xf32>
    %69 = tpu.matmul %67, %68, %cst_33 {dimension_numbers = #tpu.dot_dimension_numbers<[1], [0], [0], [1], [0, 0, 1, 1], [], []>} : vector<16x128xbf16>, vector<128x256xbf16>, vector<16x256xf32> -> vector<16x256xf32>
    %cst_34 = arith.constant 0.000000e+00 : f32
    %70 = vector.broadcast %cst_34 : f32 to vector<16x256xf32>
    %71 = arith.maximumf %69, %70 : vector<16x256xf32>
    %72 = arith.truncf %71 : vector<16x256xf32> to vector<16x256xbf16>
    %c0_35 = arith.constant 0 : index
    %c0_36 = arith.constant 0 : index
    %73 = vector.load %arg7[%c0_35, %c0_36] : memref<256x128xbf16, #tpu.memory_space<vmem>>, vector<256x128xbf16>
    %cst_37 = arith.constant dense<0.000000e+00> : vector<16x128xf32>
    %74 = tpu.matmul %72, %73, %cst_37 {dimension_numbers = #tpu.dot_dimension_numbers<[1], [0], [0], [1], [0, 0, 1, 1], [], []>} : vector<16x256xbf16>, vector<256x128xbf16>, vector<16x128xf32> -> vector<16x128xf32>
    %75 = arith.addf %66, %74 : vector<16x128xf32>
    %c0_38 = arith.constant 0 : index
    %c0_39 = arith.constant 0 : index
    %76 = vector.load %arg10[%c0_38, %c0_39] : memref<1x128xf32, #tpu.memory_space<vmem>>, vector<1x128xf32>
    %c0_40 = arith.constant 0 : index
    %c0_41 = arith.constant 0 : index
    %77 = vector.load %arg11[%c0_40, %c0_41] : memref<1x128xf32, #tpu.memory_space<vmem>>, vector<1x128xf32>
    %cst_42 = arith.constant dense<0.000000e+00> : vector<16xf32>
    %78 = vector.multi_reduction <add>, %75, %cst_42 [1] : vector<16x128xf32> to vector<16xf32>
    %79 = vector.shape_cast %78 : vector<16xf32> to vector<16x1xf32>
    %cst_43 = arith.constant 1.280000e+02 : f32
    %80 = vector.broadcast %cst_43 : f32 to vector<16x1xf32>
    %81 = arith.divf %79, %80 : vector<16x1xf32>
    %82 = vector.broadcast %81 : vector<16x1xf32> to vector<16x128xf32>
    %83 = arith.subf %75, %82 : vector<16x128xf32>
    %84 = arith.mulf %83, %83 : vector<16x128xf32>
    %cst_44 = arith.constant dense<0.000000e+00> : vector<16xf32>
    %85 = vector.multi_reduction <add>, %84, %cst_44 [1] : vector<16x128xf32> to vector<16xf32>
    %86 = vector.shape_cast %85 : vector<16xf32> to vector<16x1xf32>
    %cst_45 = arith.constant 1.280000e+02 : f32
    %87 = vector.broadcast %cst_45 : f32 to vector<16x1xf32>
    %88 = arith.divf %86, %87 : vector<16x1xf32>
    %89 = vector.broadcast %81 : vector<16x1xf32> to vector<16x128xf32>
    %90 = arith.subf %75, %89 : vector<16x128xf32>
    %cst_46 = arith.constant 9.99999974E-6 : f32
    %91 = vector.broadcast %cst_46 : f32 to vector<16x1xf32>
    %92 = arith.addf %88, %91 : vector<16x1xf32>
    %93 = math.rsqrt %92 : vector<16x1xf32>
    %94 = vector.broadcast %93 : vector<16x1xf32> to vector<16x128xf32>
    %95 = arith.mulf %90, %94 : vector<16x128xf32>
    %96 = vector.broadcast %76 : vector<1x128xf32> to vector<16x128xf32>
    %97 = arith.mulf %95, %96 : vector<16x128xf32>
    %98 = vector.broadcast %77 : vector<1x128xf32> to vector<16x128xf32>
    %99 = arith.addf %97, %98 : vector<16x128xf32>
    %100 = vector.shape_cast %99 : vector<16x128xf32> to vector<2x8x128xf32>
    %101 = arith.truncf %100 : vector<2x8x128xf32> to vector<2x8x128xbf16>
    %c0_47 = arith.constant 0 : index
    %c0_48 = arith.constant 0 : index
    %c0_49 = arith.constant 0 : index
    %102 = vector.load %arg12[%c0_47, %c0_48, %c0_49] : memref<2x8x128xbf16, #tpu.memory_space<vmem>>, vector<2x8x128xbf16>
    tpu.vector_store %arg12[%c0_47, %c0_48, %c0_49], %101 {strides = array<i32>} : memref<2x8x128xbf16, #tpu.memory_space<vmem>>, vector<2x8x128xbf16>,
    return
  }
}

</mosaic_0001>

<bundles_post_ra>
// kernel: tpu_custom_call.1
= control target key start
LH: loop header
LB: loop body
LE: loop exit
PB: predicated region body
PF: predicated region fallthrough
CT: control target
= control target key end

     0   :  { %17 = vsyncpa [#allocation3], 0  ;;  %s2077_s0 = inlined_call_operand.hbm [shape: bf16[2,8,128], index: 0, kind: input, shape index: {}]   ;;  %s2078_s1 = inlined_call_operand.vmem [shape: f32[2,8], index: 1, kind: input, shape index: {}]   ;;  %s2079_s2 = inlined_call_operand.hbm [shape: bf16[128,128], index: 2, kind: input, shape index: {}]   ;;  %s2080_s3 = inlined_call_operand.hbm [shape: bf16[128,128], index: 3, kind: input, shape index: {}]   ;;  %s2081_s4 = inlined_call_operand.hbm [shape: bf16[128,128], index: 4, kind: input, shape index: {}]   ;;  %s2082_s5 = inlined_call_operand.hbm [shape: bf16[128,128], index: 5, kind: input, shape index: {}]   ;;  %s2083_s6 = inlined_call_operand.hbm [shape: bf16[128,256], index: 6, kind: input, shape index: {}]   ;;  %s2084_s7 = inlined_call_operand.hbm [shape: bf16[256,128], index: 7, kind: input, shape index: {}]   ;;  %s2085_s8 = inlined_call_operand.vmem [shape: f32[1,128], index: 8, kind: input, shape index: {}]   ;;  %s2086_s9 = inlined_call_operand.vmem [shape: f32[1,128], index: 9, kind: input, shape index: {}]   ;;  %s2087_s10 = inlined_call_operand.vmem [shape: f32[1,128], index: 10, kind: input, shape index: {}]   ;;  %s2088_s11 = inlined_call_operand.vmem [shape: f32[1,128], index: 11, kind: input, shape index: {}]   ;;  %s2089_s12 = inlined_call_operand.hbm [shape: bf16[2,8,128], index: 12, kind: output, shape index: {}]  }
   0x1   :  { %18 = vsyncpa [#allocation6], 0 }
   0x2   :  { %19 = vsyncpa [#allocation9], 0 }
   0x3   :  { %20 = vsyncpa [#allocation12], 0 }
   0x4   :  { %21 = vsyncpa [#allocation4], 0  ;;  %s1782_s21 = smov [#allocation5]   ;;  %s1783_s23 = smov [#allocation8]  }
   0x5   :  { %s41_s22 = sshll.u32 %s1782_s21, 4  ;;  %s65_s24 = sshll.u32 %s1783_s23, 4  ;;  %s42_s22 = int_to_ptr.vmem [resolvable:$true] %s41_s22  ;;  %s1863_s24 = int_to_ptr.vmem [resolvable:$true] %s65_s24 }
   0x6   :  { %s1596_s27 = scalar_lea.hbm %s2079_s2, 1024 }
   0x7   :  { %p1597_p0 = scmp.ne.s32.totalorder %s2079_s2, %s1596_s27  ;;  %p1600_p1 = scmp.lt.u32.totalorder %s1596_s27, %s2079_s2 }
   0x9   :  { %p1602_p2 = pnand %p1600_p1, %p1597_p0 }
   0xb   :  { %1605 = shalt.err (!%p1602_p2)
}
   0xc   :  { %s1606_s14 = scalar_lea.vmem %s42_s22, 1024  ;;  %p1611_p4 = scmp.lt.s32.totalorder %s42_s22, %s42_s22 }
   0xd   :  { %p1607_p3 = scmp.ne.s32.totalorder %s42_s22, %s1606_s14  ;;  %p1612_p5 = scmp.lt.s32.totalorder %s1606_s14, %s1606_s14 }
   0xf   :  { %p1613_p6 = por %p1612_p5, %p1611_p4 }
  0x11   :  { %p1614_p7 = pnand %p1613_p6, %p1607_p3 }
  0x13   :  { %1617 = shalt.err (!%p1614_p7)
}
  0x14   :  { %s1784_s15 = smov 64   ;;  %s1785_s16 = smov 4  }
  0x15   :  { %47 = dma.hbm_to_vmem [thread:$0]  %s2079_s2, 1024, %s42_s22, [#allocation6], %s1784_s15, %s1784_s15, %s1785_s16  }
  0x16   :  { %s1618_s21 = scalar_lea.hbm %s2081_s4, 1024 }
  0x17   :  { %p1619_p8 = scmp.ne.s32.totalorder %s2081_s4, %s1618_s21  ;;  %p1622_p9 = scmp.lt.u32.totalorder %s1618_s21, %s2081_s4 }
  0x19   :  { %p1624_p10 = pnand %p1622_p9, %p1619_p8 }
  0x1b   :  { %1627 = shalt.err (!%p1624_p10)
}
  0x1c   :  { %s1628_s28 = scalar_lea.vmem %s1863_s24, 1024  ;;  %p1633_p12 = scmp.lt.s32.totalorder %s1863_s24, %s1863_s24 }
  0x1d   :  { %p1629_p11 = scmp.ne.s32.totalorder %s1863_s24, %s1628_s28  ;;  %p1634_p13 = scmp.lt.s32.totalorder %s1628_s28, %s1628_s28 }
  0x1f   :  { %p1635_p0 = por %p1634_p13, %p1633_p12 }
  0x21   :  { %p1636_p1 = pnand %p1635_p0, %p1629_p11 }
  0x23   :  { %1639 = shalt.err (!%p1636_p1)
}
  0x24   :  { %71 = dma.hbm_to_vmem [thread:$0]  %s2081_s4, 1024, %s1863_s24, [#allocation9], %s1784_s15, %s1784_s15, %s1785_s16  }
  0x25   :  { %s1786_s29 = smov [#allocation11]   ;;  %s1640_s17 = scalar_lea.hbm %s2083_s6, 2048 }
  0x26   :  { %s89_s30 = sshll.u32 %s1786_s29, 4  ;;  %p1641_p2 = scmp.ne.s32.totalorder %s2083_s6, %s1640_s17  ;;  %s90_s30 = int_to_ptr.vmem [resolvable:$true] %s89_s30 }
  0x27   :  { %p1644_p3 = scmp.lt.u32.totalorder %s1640_s17, %s2083_s6 }
  0x29   :  { %p1646_p4 = pnand %p1644_p3, %p1641_p2 }
  0x2b   :  { %1649 = shalt.err (!%p1646_p4)
}
  0x2c   :  { %s1650_s23 = scalar_lea.vmem %s90_s30, 2048  ;;  %p1655_p6 = scmp.lt.s32.totalorder %s90_s30, %s90_s30 }
  0x2d   :  { %p1651_p5 = scmp.ne.s32.totalorder %s90_s30, %s1650_s23  ;;  %p1656_p7 = scmp.lt.s32.totalorder %s1650_s23, %s1650_s23 }
  0x2f   :  { %p1657_p8 = por %p1656_p7, %p1655_p6 }
  0x31   :  { %p1658_p9 = pnand %p1657_p8, %p1651_p5 }
  0x33   :  { %1661 = shalt.err (!%p1658_p9)
}
  0x34   :  { %s1787_s4 = smov 128   ;;  %s1788_s24 = smov 8  }
  0x35   :  { %95 = dma.hbm_to_vmem [thread:$0]  %s2083_s6, 2048, %s90_s30, [#allocation12], %s1787_s4, %s1787_s4, %s1788_s24  }
  0x36   :  { %s1789_s27 = smov [#allocation2]   ;;  %s1790_s2 = smov [#allocation7]  }
  0x37   :  { %s27_s28 = sshll.u32 %s1789_s27, 4  ;;  %s53_s22 = sshll.u32 %s1790_s2, 4  ;;  %s28_s28 = int_to_ptr.vmem [resolvable:$true] %s27_s28  ;;  %s54_s22 = int_to_ptr.vmem [resolvable:$true] %s53_s22 }
  0x38   :  { %s1662_s14 = scalar_lea.hbm %s2077_s0, 128 }
  0x39   :  { %p1663_p10 = scmp.ne.s32.totalorder %s2077_s0, %s1662_s14  ;;  %p1666_p11 = scmp.lt.u32.totalorder %s1662_s14, %s2077_s0 }
  0x3b   :  { %p1668_p12 = pnand %p1666_p11, %p1663_p10 }
  0x3d   :  { %1671 = shalt.err (!%p1668_p12)
}
  0x3e   :  { %s1672_s6 = scalar_lea.vmem %s28_s28, 128  ;;  %p1677_p0 = scmp.lt.s32.totalorder %s28_s28, %s28_s28 }
  0x3f   :  { %p1673_p13 = scmp.ne.s32.totalorder %s28_s28, %s1672_s6  ;;  %p1678_p1 = scmp.lt.s32.totalorder %s1672_s6, %s1672_s6 }
  0x41   :  { %p1679_p2 = por %p1678_p1, %p1677_p0 }
  0x43   :  { %p1680_p3 = pnand %p1679_p2, %p1673_p13 }
  0x45   :  { %1683 = shalt.err (!%p1680_p3)
}
  0x46   :  { %33 = dma.hbm_to_vmem [thread:$0]  %s2077_s0, 128, %s28_s28, [#allocation3], %s1784_s15, %s1784_s15, %s1785_s16  }
  0x47   :  { %s1684_s24 = scalar_lea.hbm %s2080_s3, 1024 }
  0x48   :  { %p1685_p4 = scmp.ne.s32.totalorder %s2080_s3, %s1684_s24  ;;  %p1688_p5 = scmp.lt.u32.totalorder %s1684_s24, %s2080_s3 }
  0x4a   :  { %p1690_p6 = pnand %p1688_p5, %p1685_p4 }
  0x4c   :  { %1693 = shalt.err (!%p1690_p6)
}
  0x4d   :  { %s1694_s29 = scalar_lea.vmem %s54_s22, 1024  ;;  %p1699_p8 = scmp.lt.s32.totalorder %s54_s22, %s54_s22 }
  0x4e   :  { %p1695_p7 = scmp.ne.s32.totalorder %s54_s22, %s1694_s29  ;;  %p1700_p9 = scmp.lt.s32.totalorder %s1694_s29, %s1694_s29 }
  0x50   :  { %p1701_p10 = por %p1700_p9, %p1699_p8 }
  0x52   :  { %p1702_p11 = pnand %p1701_p10, %p1695_p7 }
  0x54   :  { %1705 = shalt.err (!%p1702_p11)
}
  0x55   :  { %59 = dma.hbm_to_vmem [thread:$0]  %s2080_s3, 1024, %s54_s22, [#allocation6], %s1784_s15, %s1784_s15, %s1785_s16  }
  0x56   :  { %s1791_s13 = smov [#allocation10]   ;;  %s1792_s17 = smov [#allocation13]  }
  0x57   :  { %s77_s14 = sshll.u32 %s1791_s13, 4  ;;  %s101_s18 = sshll.u32 %s1792_s17, 4  ;;  %s78_s14 = int_to_ptr.vmem [resolvable:$true] %s77_s14  ;;  %s102_s18 = int_to_ptr.vmem [resolvable:$true] %s101_s18 }
  0x58   :  { %s1706_s6 = scalar_lea.hbm %s2082_s5, 1024 }
  0x59   :  { %p1707_p12 = scmp.ne.s32.totalorder %s2082_s5, %s1706_s6  ;;  %p1710_p13 = scmp.lt.u32.totalorder %s1706_s6, %s2082_s5 }
  0x5b   :  { %p1712_p0 = pnand %p1710_p13, %p1707_p12 }
  0x5d   :  { %1715 = shalt.err (!%p1712_p0)
}
  0x5e   :  { %s1716_s3 = scalar_lea.vmem %s78_s14, 1024  ;;  %p1721_p2 = scmp.lt.s32.totalorder %s78_s14, %s78_s14 }
  0x5f   :  { %p1717_p1 = scmp.ne.s32.totalorder %s78_s14, %s1716_s3  ;;  %p1722_p3 = scmp.lt.s32.totalorder %s1716_s3, %s1716_s3 }
  0x61   :  { %p1723_p4 = por %p1722_p3, %p1721_p2 }
  0x63   :  { %p1724_p5 = pnand %p1723_p4, %p1717_p1 }
  0x65   :  { %1727 = shalt.err (!%p1724_p5)
}
  0x66   :  { %83 = dma.hbm_to_vmem [thread:$0]  %s2082_s5, 1024, %s78_s14, [#allocation9], %s1784_s15, %s1784_s15, %s1785_s16  }
  0x67   :  { %s1728_s27 = scalar_lea.hbm %s2084_s7, 2048 }
  0x68   :  { %p1729_p6 = scmp.ne.s32.totalorder %s2084_s7, %s1728_s27  ;;  %p1732_p7 = scmp.lt.u32.totalorder %s1728_s27, %s2084_s7 }
  0x6a   :  { %p1734_p8 = pnand %p1732_p7, %p1729_p6 }
  0x6c   :  { %1737 = shalt.err (!%p1734_p8)
}
  0x6d   :  { %s1738_s13 = scalar_lea.vmem %s102_s18, 2048  ;;  %p1743_p10 = scmp.lt.s32.totalorder %s102_s18, %s102_s18 }
  0x6e   :  { %p1739_p9 = scmp.ne.s32.totalorder %s102_s18, %s1738_s13  ;;  %p1744_p11 = scmp.lt.s32.totalorder %s1738_s13, %s1738_s13 }
  0x70   :  { %p1745_p12 = por %p1744_p11, %p1743_p10 }
  0x72   :  { %p1746_p13 = pnand %p1745_p12, %p1739_p9 }
  0x74   :  { %1749 = shalt.err (!%p1746_p13)
}
  0x75   :  { %107 = dma.hbm_to_vmem [thread:$0]  %s2084_s7, 2048, %s102_s18, [#allocation12], %s1784_s15, %s1784_s15, %s1785_s16  }
  0x76   :  { %1772 = dma.done.wait [#allocation3], 128  }
  0x77   :  { %1773 = vsyncadd [#allocation3], 4294967168 }
  0x78   :  { %1774 = dma.done.wait [#allocation6], 2048  }
  0x79   :  { %1775 = vsyncadd [#allocation6], 4294965248 }
  0x7a   :  { %1776 = dma.done.wait [#allocation9], 2048  }
  0x7b   :  { %1777 = vsyncadd [#allocation9], 4294965248 }
  0x7c   :  { %1778 = dma.done.wait [#allocation12], 4096  }
  0x7d   :  { %1779 = vsyncadd [#allocation12], 4294963200  ;;  %v1793_v0 = vmov 0.0   ;;  %vm1794_vm0 = vmmov 0   ;;  %v1506_v1 = vld [vmem:[#allocation7] sm:$0xff]   ;;  %v1508_v3 = vld [vmem:[#allocation7 + $0x8] sm:$0xff]   ;;  %v482_v42 = vlaneseq }
  0x7e   :  { %1406 = vmatprep.subr.bf16.mxu1 %v1793_v0  ;;  %1386 = vmatprep.subr.bf16.mxu0 %v1793_v0  ;;  %v1507_v2 = vld [vmem:[#allocation5] sm:$0xff]   ;;  %v1509_v4 = vld [vmem:[#allocation5 + $0x8] sm:$0xff]   ;;  %v1510_v5 = vld [vmem:[#allocation7 + $0x10] sm:$0xff]   ;;  %v1795_v40 = vmov 1966171168   ;;  %vm591_vm1 = vcmask 64512  }
  0x7f   :  { %1422 = vmatprep.mubr.msk.bf16.mxu1 %vm1794_vm0, %v1793_v0  ;;  %1402 = vmatprep.mubr.msk.bf16.mxu0 %vm1794_vm0, %v1793_v0  ;;  %v1511_v6 = vld [vmem:[#allocation5 + $0x10] sm:$0xff]   ;;  %v1512_v7 = vld [vmem:[#allocation7 + $0x18] sm:$0xff]   ;;  %v1514_v9 = vld [vmem:[#allocation7 + $0x20] sm:$0xff]   ;;  %v480_v41 = vunpack.c.l.s4 %v1795_v40  ;;  %v483_v44 = vshrl.u32 %v482_v42, 7  ;;  %vm619_vm2 = vcmask 1043456   ;;  %s1797_s21 = smov [#allocation14]  }
  0x80   :  { %1407 = vmatpush3.bf16.msra.mxu1 %v1506_v1  ;;  %1387 = vmatpush3.bf16.msra.mxu0 %v1507_v2  ;;  %v1513_v8 = vld [vmem:[#allocation5 + $0x18] sm:$0xff]   ;;  %v1515_v10 = vld [vmem:[#allocation5 + $0x20] sm:$0xff]   ;;  %v1516_v11 = vld [vmem:[#allocation7 + $0x28] sm:$0xff]   ;;  %s1226_s23 = sshll.u32 %s1797_s21, 4  ;;  %s1227_s23 = int_to_ptr.vmem [resolvable:$true] %s1226_s23 }
  0x81   :  { %1408 = vmatprep.subr.bf16.mxu1 %v1793_v0  ;;  %1388 = vmatprep.subr.bf16.mxu0 %v1793_v0  ;;  %v1517_v12 = vld [vmem:[#allocation5 + $0x28] sm:$0xff]   ;;  %v1518_v13 = vld [vmem:[#allocation7 + $0x30] sm:$0xff]   ;;  %v1520_v15 = vld [vmem:[#allocation7 + $0x38] sm:$0xff]   ;;  %v481_v43 = vunpack.c.0.s8 %v480_v41  ;;  %v503_v51 = vsub.s32 0, %v483_v44  ;;  %s1750_s4 = scalar_lea.vmem %s1227_s23, 128  ;;  %p1755_p1 = scmp.lt.s32.totalorder %s1227_s23, %s1227_s23 }
  0x82   :  { %v1519_v14 = vld [vmem:[#allocation5 + $0x30] sm:$0xff]   ;;  %v1990_v16 = vld [vmem:[#allocation2] sm:$0xff]   ;;  %v1523_v32 = vld [vmem:[#allocation8] sm:$0xff]   ;;  %p1751_p0 = scmp.ne.s32.totalorder %s1227_s23, %s1750_s4  ;;  %p1756_p2 = scmp.lt.s32.totalorder %s1750_s4, %s1750_s4 }
  0x83   :  { %v1521_v17 = vld [vmem:[#allocation5 + $0x38] sm:$0xff]   ;;  %v1524_v33 = vld [vmem:[#allocation8 + $0x8] sm:$0xff]   ;;  %v1525_v34 = vld [vmem:[#allocation8 + $0x10] sm:$0xff]   ;;  %v484_v45 = vsub.s32 %v481_v43, %v483_v44 }
  0x84   :  { %1409 = vmatpush3.bf16.msra.mxu1 %v1508_v3  ;;  %1389 = vmatpush3.bf16.msra.mxu0 %v1509_v4  ;;  %v1526_v35 = vld [vmem:[#allocation8 + $0x18] sm:$0xff]   ;;  %v1527_v36 = vld [vmem:[#allocation8 + $0x20] sm:$0xff]   ;;  %v1528_v37 = vld [vmem:[#allocation8 + $0x28] sm:$0xff]   ;;  %p1757_p3 = por %p1756_p2, %p1755_p1 }
  0x85   :  { %1410 = vmatprep.subr.bf16.mxu1 %v1793_v0  ;;  %1390 = vmatprep.subr.bf16.mxu0 %v1793_v0  ;;  %v1529_v38 = vld [vmem:[#allocation8 + $0x30] sm:$0xff]   ;;  %v1530_v39 = vld [vmem:[#allocation8 + $0x38] sm:$0xff]  }
  0x86   :  { %v1266_v46 = vld.sshfl [vmem:[%s2078_s1] sm:$0x11 pattern:$0x75316420]  ;;  %p1758_p4 = pnand %p1757_p3, %p1751_p0 }
  0x87   :  { %v485_v47 = vrot.slane %v1266_v46, %v484_v45  ;;  %v478_v49 = vcombine.high %v1266_v46, %v1266_v46  ;;  %v1538_v40 = vld [vmem:[#allocation10 + $0x38] sm:$0xff]  }
  0x88   :  { %1411 = vmatpush3.bf16.msra.mxu1 %v1510_v5  ;;  %1391 = vmatpush3.bf16.msra.mxu0 %v1511_v6 }
  0x89   :  { %1412 = vmatprep.subr.bf16.mxu1 %v1793_v0  ;;  %1392 = vmatprep.subr.bf16.mxu0 %v1793_v0  ;;  %v1267_v48 = vadd.f32 -1.0, %v485_v47  ;;  %v492_v52 = vrot.slane %v478_v49, %v484_v45 }
  0x8b   :  { %v497_v50 = vmul.f32 1e+09, %v1267_v48  ;;  %v1268_v54 = vadd.f32 -1.0, %v492_v52 }
  0x8c   :  { %1413 = vmatpush3.bf16.msra.mxu1 %v1512_v7  ;;  %1393 = vmatpush3.bf16.msra.mxu0 %v1513_v8 }
  0x8d   :  { %1414 = vmatprep.subr.bf16.mxu1 %v1793_v0  ;;  %1394 = vmatprep.subr.bf16.mxu0 %v1793_v0  ;;  %v504_v53 = vrot.slane %v497_v50, %v503_v51  ;;  %v498_v58 = vmul.f32 1e+09, %v1268_v54  ;;  %v815_v50 = vunpack.c.l.bf16 %v1990_v16 }
  0x8f   :  { %v508_v62 = vrot.slane %v498_v58, %v503_v51  ;;  %v816_v51 = vunpack.c.h.bf16 %v1990_v16  ;;  %v1541_v58 = vld [vmem:[#allocation11 + $0x4] ss:$8 sps:$4 sm:$0xff]  }
  0x90   :  { %1415 = vmatpush3.bf16.msra.mxu1 %v1514_v9  ;;  %1395 = vmatpush3.bf16.msra.mxu0 %v1515_v10 }
  0x91   :  { %1416 = vmatprep.subr.bf16.mxu1 %v1793_v0  ;;  %1396 = vmatprep.subr.bf16.mxu0 %v1793_v0 }
  0x94   :  { %1417 = vmatpush3.bf16.msra.mxu1 %v1516_v11  ;;  %1397 = vmatpush3.bf16.msra.mxu0 %v1517_v12 }
  0x95   :  { %1418 = vmatprep.subr.bf16.mxu1 %v1793_v0  ;;  %1398 = vmatprep.subr.bf16.mxu0 %v1793_v0 }
  0x98   :  { %1419 = vmatpush3.bf16.msra.mxu1 %v1518_v13  ;;  %1399 = vmatpush3.bf16.msra.mxu0 %v1519_v14 }
  0x99   :  { %1420 = vmatprep.subr.bf16.mxu1 %v1793_v0  ;;  %1400 = vmatprep.subr.bf16.mxu0 %v1793_v0 }
  0x9c   :  { %1421 = vmatpush3.bf16.msra.mxu1 %v1520_v15  ;;  %1401 = vmatpush3.bf16.msra.mxu0 %v1521_v17 }
  0x9d   :  { %1446 = vmatprep.subr.bf16.mxu1 %v1793_v0  ;;  %1426 = vmatprep.subr.bf16.mxu0 %v1793_v0 }
  0x9f   :  { %1423 = vmatmul.mubr.bf16.vlgmr.msra.gmra.mrb[0].mxu1 %v1990_v16  ;;  %1403 = vmatmul.mubr.bf16.vlgmr.msra.gmra.mrb[0].mxu0 %v1990_v16 }
  0xa0   :  { %1448 = vmatprep.mubr.msk.bf16.mxu1 %vm1794_vm0, %v1793_v0  ;;  %1442 = vmatprep.mubr.msk.bf16.mxu0 %vm1794_vm0, %v1793_v0 }
  0xa1   :  { %1427 = vmatpush3.bf16.msra.mxu0 %v1523_v32 }
  0xa2   :  { %1428 = vmatprep.subr.bf16.mxu0 %v1793_v0 }
  0xa5   :  { %1429 = vmatpush3.bf16.msra.mxu0 %v1524_v33 }
  0xa6   :  { %1430 = vmatprep.subr.bf16.mxu0 %v1793_v0 }
  0xa9   :  { %1431 = vmatpush3.bf16.msra.mxu0 %v1525_v34 }
  0xaa   :  { %1432 = vmatprep.subr.bf16.mxu0 %v1793_v0 }
  0xad   :  { %1433 = vmatpush3.bf16.msra.mxu0 %v1526_v35 }
  0xae   :  { %1434 = vmatprep.subr.bf16.mxu0 %v1793_v0 }
  0xb1   :  { %1435 = vmatpush3.bf16.msra.mxu0 %v1527_v36 }
  0xb2   :  { %1436 = vmatprep.subr.bf16.mxu0 %v1793_v0 }
  0xb5   :  { %1437 = vmatpush3.bf16.msra.mxu0 %v1528_v37 }
  0xb6   :  { %1438 = vmatprep.subr.bf16.mxu0 %v1793_v0 }
  0xb9   :  { %1439 = vmatpush3.bf16.msra.mxu0 %v1529_v38  ;;  %v1536_v38 = vld [vmem:[#allocation10 + $0x28] sm:$0xff]  }
  0xba   :  { %1440 = vmatprep.subr.bf16.mxu0 %v1793_v0 }
  0xbd   :  { %1441 = vmatpush3.bf16.msra.mxu0 %v1530_v39  ;;  %v1537_v39 = vld [vmem:[#allocation10 + $0x30] sm:$0xff]  }
  0xbe   :  { %1470 = vmatprep.subr.bf16.mxu0 %v1793_v0 }
  0xc0   :  { %1443 = vmatmul.mubr.bf16.vlgmr.msra.gmra.mrb[4].mxu0 %v1990_v16 }
  0xc1   :  { %1486 = vmatprep.mubr.msk.bf16.mxu0 %vm1794_vm0, %v1793_v0 }
 0x172   :  { %v350_v18 = vpop.f32.mrb[0].mxu1  ;;  %v245_v21 = vpop.f32.mrb[0].mxu0 }
 0x173   :  { %v466_v19 = vpack.c.bf16 %v350_v18, %v350_v18  ;;  %v1424_v20 = vpop.f32.mrb[1].mxu1  ;;  %v462_v23 = vmul.f32 0.088388346, %v245_v21  ;;  %v1404_v24 = vpop.f32.mrb[1].mxu0 }
 0x174   :  { %v353_v22 = vpop.f32.mrb[2].mxu1  ;;  %v248_v26 = vpop.f32.mrb[2].mxu0 }
 0x175   :  { %v1425_v25 = vpop.f32.mrb[3].mxu1  ;;  %1447 = vmatpush3.bf16.xpose.msra.mxu1 %v466_v19  ;;  %v1405_v27 = vpop.f32.mrb[3].mxu0  ;;  %v464_v28 = vpack.c.bf16 %v462_v23, %v462_v23  ;;  %v467_v29 = vpack.c.bf16 %v353_v22, %v353_v22  ;;  %v463_v30 = vmul.f32 0.088388346, %v248_v26  ;;  %v1532_v26 = vld [vmem:[#allocation10 + $0x8] sm:$0xff]  }
 0x176   :  { %1452 = vmatprep.subr.bf16.mxu1 %v1793_v0  ;;  %v1531_v25 = vld [vmem:[#allocation10] sm:$0xff]   ;;  %v1533_v27 = vld [vmem:[#allocation10 + $0x10] sm:$0xff]  }
 0x177   :  { %v465_v31 = vpack.c.bf16 %v463_v30, %v463_v30  ;;  %1471 = vmatpush3.bf16.msra.mxu0 %v1531_v25  ;;  %v1569_v25 = vld [vmem:[#allocation13 + $0x58] sm:$0xff]  }
 0x178   :  { %1472 = vmatprep.subr.bf16.mxu0 %v1793_v0 }
 0x17b   :  { %1473 = vmatpush3.bf16.msra.mxu0 %v1532_v26  ;;  %v1570_v26 = vld [vmem:[#allocation13 + $0x18] sm:$0xff]  }
 0x17c   :  { %1449 = vmatmul.mubr.bf16.vlgmr.msra.gmra.mrb[4].mxu1 %v464_v28  ;;  %1474 = vmatprep.subr.bf16.mxu0 %v1793_v0  ;;  %v1534_v28 = vld [vmem:[#allocation10 + $0x18] sm:$0xff]  }
 0x17d   :  { %1453 = vmatpush3.bf16.xpose.msra.mxu1 %v467_v29  ;;  %1454 = vmatprep.mubr.msk.bf16.mxu1 %vm1794_vm0, %v1793_v0  ;;  %v1535_v29 = vld [vmem:[#allocation10 + $0x20] sm:$0xff]  }
 0x17e   :  { %1458 = vmatprep.subr.bf16.mxu1 %v1793_v0 }
 0x17f   :  { %1475 = vmatpush3.bf16.msra.mxu0 %v1533_v27  ;;  %v1571_v27 = vld [vmem:[#allocation13 + $0x60] sm:$0xff]  }
 0x180   :  { %1476 = vmatprep.subr.bf16.mxu0 %v1793_v0 }
 0x183   :  { %1477 = vmatpush3.bf16.msra.mxu0 %v1534_v28  ;;  %v1572_v28 = vld [vmem:[#allocation13 + $0x20] sm:$0xff]  }
 0x184   :  { %1455 = vmatmul.mubr.bf16.vlgmr.msra.gmra.mrb[8].mxu1 %v465_v31  ;;  %1478 = vmatprep.subr.bf16.mxu0 %v1793_v0 }
 0x185   :  { %1460 = vmatprep.mubr.msk.bf16.mxu1 %vm1794_vm0, %v1793_v0 }
 0x187   :  { %1479 = vmatpush3.bf16.msra.mxu0 %v1535_v29  ;;  %v1573_v29 = vld [vmem:[#allocation13 + $0x68] sm:$0xff]  }
 0x188   :  { %1480 = vmatprep.subr.bf16.mxu0 %v1793_v0 }
 0x18b   :  { %1481 = vmatpush3.bf16.msra.mxu0 %v1536_v38  ;;  %v1279_v38 = vld [vmem:[%s2085_s8] ss:$0 sm:$0xff] }
 0x18c   :  { %1482 = vmatprep.subr.bf16.mxu0 %v1793_v0 }
 0x18f   :  { %1483 = vmatpush3.bf16.msra.mxu0 %v1537_v39 }
 0x190   :  { %1484 = vmatprep.subr.bf16.mxu0 %v1793_v0 }
 0x193   :  { %v455_v17 = vpop.f32.mrb[4].mxu0  ;;  %1485 = vmatpush3.bf16.msra.mxu0 %v1538_v40 }
 0x194   :  { %v1444_v18 = vpop.f32.mrb[5].mxu0  ;;  %v468_v20 = vpack.c.bf16 %v455_v17, %v455_v17  ;;  %v1560_v17 = vld [vmem:[#allocation11 + $0x70] ss:$8 sps:$4 sm:$0xff]  }
 0x195   :  { %v458_v19 = vpop.f32.mrb[6].mxu0  ;;  %v1796_v18 = vmov 0  }
 0x196   :  { %v1445_v21 = vpop.f32.mrb[7].mxu0  ;;  %v469_v22 = vpack.c.bf16 %v458_v19, %v458_v19  ;;  %v621_v23 = vsel %vm619_vm2, %v468_v20, 0  ;;  %v1563_v19 = vld [vmem:[#allocation13 + $0x40] sm:$0xff]  }
 0x197   :  { %1459 = vmatpush3.bf16.msra.mxu1 %v621_v23  ;;  %v1564_v20 = vld [vmem:[#allocation13] sm:$0xff]   ;;  %v1565_v21 = vld [vmem:[#allocation13 + $0x48] sm:$0xff]   ;;  %1364 = vmatprep.subr.bf16.mxu0 %v1563_v19  ;;  %v1567_v23 = vld [vmem:[#allocation13 + $0x50] sm:$0xff]  }
 0x198   :  { %v667_v24 = vsel %vm619_vm2, %v469_v22, 0  ;;  %1464 = vmatprep.subr.bf16.mxu1 %v1793_v0  ;;  %v1566_v22 = vld [vmem:[#allocation13 + $0x8] sm:$0xff]  }
 0x24f   :  { %v545_v55 = vpop.f32.mrb[4].mxu1 }
 0x250   :  { %v546_v56 = vadd.f32 %v545_v55, %v504_v53  ;;  %v1450_v57 = vpop.f32.mrb[5].mxu1 }
 0x251   :  { %v548_v59 = vpop.f32.mrb[6].mxu1  ;;  %v1539_v57 = vld [vmem:[#allocation11] ss:$8 sps:$4 sm:$0xff]  }
 0x252   :  { %v1451_v60 = vpop.f32.mrb[7].mxu1  ;;  %v592_v61 = vsel %vm591_vm1, %v546_v56, -inf  ;;  %v1544_v59 = vld [vmem:[#allocation11 + $0x14] ss:$8 sps:$4 sm:$0xff]  }
 0x253   :  { %593 = vmax.xlane.f32.xlu0 %v592_v61  ;;  %v1542_v60 = vld [vmem:[#allocation11 + $0x10] ss:$8 sps:$4 sm:$0xff]  }
 0x257   :  { %v585_v63 = vpop.f32.mrb[8].mxu1 }
 0x258   :  { %v586_v1 = vadd.f32 %v585_v63, %v508_v62  ;;  %v1456_v2 = vpop.f32.mrb[9].mxu1 }
 0x259   :  { %v588_v3 = vpop.f32.mrb[10].mxu1 }
 0x25a   :  { %v1457_v4 = vpop.f32.mrb[11].mxu1  ;;  %v595_v5 = vsel %vm591_vm1, %v586_v1, -inf }
 0x25b   :  { %596 = vmax.xlane.f32.xlu0 %v595_v5  ;;  %v1547_v5 = vld [vmem:[#allocation11 + $0x24] ss:$8 sps:$4 sm:$0xff]  }
 0x2e0   :  { %v594_v6 = vpop.xlane.xlu0 %593 }
 0x2e1   :  { %v598_v7 = vsub.f32 %v546_v56, %v594_v6  ;;  %v1545_v6 = vld [vmem:[#allocation11 + $0x20] ss:$8 sps:$4 sm:$0xff]  }
 0x2e3   :  { %v600_v8 = vmul.f32 1.442695, %v598_v7  ;;  %v1550_v7 = vld [vmem:[#allocation11 + $0x34] ss:$8 sps:$4 sm:$0xff]  }
 0x2e5   :  { %1580 = vpow2.f32 %v600_v8  ;;  %v1548_v8 = vld [vmem:[#allocation11 + $0x30] ss:$8 sps:$4 sm:$0xff]  }
 0x2e8   :  { %v597_v9 = vpop.xlane.xlu0 %596 }
 0x2e9   :  { %v599_v10 = vsub.f32 %v586_v1, %v597_v9  ;;  %v1553_v9 = vld [vmem:[#allocation11 + $0x44] ss:$8 sps:$4 sm:$0xff]  }
 0x2eb   :  { %v602_v11 = vmul.f32 1.442695, %v599_v10  ;;  %v1551_v10 = vld [vmem:[#allocation11 + $0x40] ss:$8 sps:$4 sm:$0xff]  }
 0x2ed   :  { %1582 = vpow2.f32 %v602_v11  ;;  %v1556_v11 = vld [vmem:[#allocation11 + $0x54] ss:$8 sps:$4 sm:$0xff]  }
 0x2ef   :  { %v1581_v12 = vpop.eup %1580 }
 0x2f0   :  { %v604_v13 = vsel %vm591_vm1, %v1581_v12, 0.0 }
 0x2f1   :  { %605 = vadd.xlane.f32.xlu1 %v604_v13  ;;  %v1559_v13 = vld [vmem:[#allocation11 + $0x64] ss:$8 sps:$4 sm:$0xff]  }
 0x2f7   :  { %v1583_v14 = vpop.eup %1582 }
 0x2f8   :  { %v607_v15 = vsel %vm591_vm1, %v1583_v14, 0.0 }
 0x2f9   :  { %608 = vadd.xlane.f32.xlu1 %v607_v15  ;;  %v1562_v15 = vld [vmem:[#allocation11 + $0x74] ss:$8 sps:$4 sm:$0xff]  }
 0x37e   :  { %v606_v30 = vpop.xlane.xlu1 %605 }
 0x37f   :  { %1584 = vrcp.f32 %v606_v30  ;;  %v1574_v30 = vld [vmem:[#allocation13 + $0x28] sm:$0xff]  }
 0x386   :  { %v609_v31 = vpop.xlane.xlu1 %608 }
 0x387   :  { %1586 = vrcp.f32 %v609_v31 }
 0x389   :  { %v1585_v32 = vpop.eup %1584 }
 0x38a   :  { %v612_v33 = vmul.f32 %v1585_v32, %v1581_v12  ;;  %v1554_v12 = vld [vmem:[#allocation11 + $0x50] ss:$8 sps:$4 sm:$0xff]  }
 0x38c   :  { %v614_v34 = vpack.c.bf16 %v612_v33, %v612_v33 }
 0x38e   :  { %1461 = vmatmul.mubr.msk.bf16.vlgmr.msra.gmra.mrb[12].mxu1 %vm591_vm1, %v614_v34 }
 0x38f   :  { %1465 = vmatpush3.bf16.msra.mxu1 %v667_v24  ;;  %1466 = vmatprep.mubr.msk.bf16.mxu1 %vm1794_vm0, %v1793_v0  ;;  %v1568_v24 = vld [vmem:[#allocation13 + $0x10] sm:$0xff]  }
 0x390   :  { %957 = vmatprep.subr.bf16.mxu1 %v1541_v58 }
 0x391   :  { %v1587_v35 = vpop.eup %1586 }
 0x392   :  { %v613_v36 = vmul.f32 %v1587_v35, %v1583_v14  ;;  %v1557_v14 = vld [vmem:[#allocation11 + $0x60] ss:$8 sps:$4 sm:$0xff]  }
 0x394   :  { %v615_v37 = vpack.c.bf16 %v613_v36, %v613_v36 }
 0x396   :  { %1467 = vmatmul.mubr.msk.bf16.vlgmr.msra.gmra.mrb[16].mxu1 %vm591_vm1, %v615_v37 }
 0x397   :  { %958 = vmatpush1.bf16.msra.mxu1 %v1539_v57  ;;  %989 = vmatprep.mubr.bf16.mxu1 %v1796_v18 }
 0x398   :  { %959 = vmatprep.subr.bf16.mxu1 %v1544_v59 }
 0x39b   :  { %960 = vmatpush1.bf16.msra.mxu1 %v1542_v60 }
 0x39c   :  { %961 = vmatprep.subr.bf16.mxu1 %v1547_v5 }
 0x39f   :  { %962 = vmatpush1.bf16.msra.mxu1 %v1545_v6 }
 0x3a0   :  { %963 = vmatprep.subr.bf16.mxu1 %v1550_v7 }
 0x3a3   :  { %964 = vmatpush1.bf16.msra.mxu1 %v1548_v8 }
 0x3a4   :  { %965 = vmatprep.subr.bf16.mxu1 %v1553_v9 }
 0x3a7   :  { %966 = vmatpush1.bf16.msra.mxu1 %v1551_v10 }
 0x3a8   :  { %967 = vmatprep.subr.bf16.mxu1 %v1556_v11 }
 0x3ab   :  { %968 = vmatpush1.bf16.msra.mxu1 %v1554_v12 }
 0x3ac   :  { %969 = vmatprep.subr.bf16.mxu1 %v1559_v13 }
 0x3af   :  { %970 = vmatpush1.bf16.msra.mxu1 %v1557_v14 }
 0x3b0   :  { %971 = vmatprep.subr.bf16.mxu1 %v1562_v15 }
 0x3b3   :  { %972 = vmatpush1.bf16.msra.mxu1 %v1560_v17 }
 0x461   :  { %v657_v41 = vpop.f32.mrb[12].mxu1 }
 0x462   :  { %v1462_v42 = vpop.f32.mrb[13].mxu1 }
 0x463   :  { %v660_v43 = vpop.f32.mrb[14].mxu1 }
 0x464   :  { %v1463_v44 = vpop.f32.mrb[15].mxu1  ;;  %v1280_v43 = vld [vmem:[%s2086_s9] ss:$0 sm:$0xff] }
 0x469   :  { %v703_v45 = vpop.f32.mrb[16].mxu1 }
 0x46a   :  { %v709_v46 = vpack.c.bf16 %v703_v45, %v657_v41  ;;  %v1468_v47 = vpop.f32.mrb[17].mxu1 }
 0x46b   :  { %v706_v48 = vpop.f32.mrb[18].mxu1 }
 0x46c   :  { %v1469_v49 = vpop.f32.mrb[19].mxu1  ;;  %1487 = vmatmul.mubr.bf16.vlgmr.msra.gmra.mrb[8].mxu0 %v709_v46  ;;  %v1575_v48 = vld [vmem:[#allocation13 + $0x70] sm:$0xff]  }
 0x46d   :  { %1365 = vmatpush3.bf16.msra.mxu0 %v1564_v20  ;;  %v1576_v49 = vld [vmem:[#allocation13 + $0x30] sm:$0xff]  }
 0x46e   :  { %1366 = vmatprep.subr.bf16.mxu0 %v1565_v21  ;;  %v1313_v21 = vld [vmem:[%s2087_s10] ss:$0 sm:$0xff] }
 0x471   :  { %1367 = vmatpush3.bf16.msra.mxu0 %v1566_v22 }
 0x472   :  { %1368 = vmatprep.subr.bf16.mxu0 %v1567_v23 }
 0x475   :  { %1369 = vmatpush3.bf16.msra.mxu0 %v1568_v24 }
 0x476   :  { %1370 = vmatprep.subr.bf16.mxu0 %v1569_v25 }
 0x479   :  { %1371 = vmatpush3.bf16.msra.mxu0 %v1570_v26  ;;  %v1314_v26 = vld [vmem:[%s2088_s11] ss:$0 sm:$0xff] }
 0x47a   :  { %1372 = vmatprep.subr.bf16.mxu0 %v1571_v27 }
 0x47d   :  { %1373 = vmatpush3.bf16.msra.mxu0 %v1572_v28 }
 0x47e   :  { %1374 = vmatprep.subr.bf16.mxu0 %v1573_v29 }
 0x481   :  { %1375 = vmatpush3.bf16.msra.mxu0 %v1574_v30 }
 0x482   :  { %1376 = vmatprep.subr.bf16.mxu0 %v1575_v48 }
 0x485   :  { %1377 = vmatpush3.bf16.msra.mxu0 %v1576_v49 }
 0x53f   :  { %v808_v52 = vpop.f32.mrb[8].mxu0 }
 0x540   :  { %v817_v53 = vadd.f32 %v815_v50, %v808_v52  ;;  %v1488_v54 = vpop.f32.mrb[9].mxu0  ;;  %v1577_v50 = vld [vmem:[#allocation13 + $0x78] sm:$0xff]  }
 0x541   :  { %v811_v0 = vpop.f32.mrb[10].mxu0  ;;  %1378 = vmatprep.subr.bf16.mxu0 %v1577_v50 }
 0x542   :  { %v818_v55 = vadd.f32 %v816_v51, %v811_v0  ;;  %821 = vadd.xlane.f32.xlu0 %v817_v53  ;;  %v1489_v56 = vpop.f32.mrb[11].mxu0  ;;  %v1578_v51 = vld [vmem:[#allocation13 + $0x38] sm:$0xff]  }
 0x543   :  { %1379 = vmatpush3.bf16.msra.mxu0 %v1578_v51 }
 0x544   :  { %823 = vadd.xlane.f32.xlu1 %v818_v55 }
 0x5cf   :  { %v822_v61 = vpop.xlane.xlu0 %821 }
 0x5d0   :  { %v826_v62 = vmul.f32 0.0078125, %v822_v61 }
 0x5d1   :  { %v824_v63 = vpop.xlane.xlu1 %823 }
 0x5d2   :  { %v2040_v16 = vsub.f32 %v817_v53, %v826_v62  ;;  %v827_v1 = vmul.f32 0.0078125, %v824_v63 }
 0x5d4   :  { %v2042_v2 = vsub.f32 %v818_v55, %v827_v1  ;;  %v830_v3 = vmul.f32 %v2040_v16, %v2040_v16 }
 0x5d6   :  { %832 = vadd.xlane.f32.xlu0 %v830_v3  ;;  %v831_v4 = vmul.f32 %v2042_v2, %v2042_v2 }
 0x5d8   :  { %834 = vadd.xlane.f32.xlu1 %v831_v4 }
 0x663   :  { %v833_v31 = vpop.xlane.xlu0 %832 }
 0x664   :  { %v836_v32 = vmul.f32 0.0078125, %v833_v31 }
 0x665   :  { %v835_v33 = vpop.xlane.xlu1 %834 }
 0x666   :  { %v838_v34 = vadd.f32 1e-05, %v836_v32  ;;  %v837_v35 = vmul.f32 0.0078125, %v835_v33 }
 0x668   :  { %1588 = vrsqrt.f32 %v838_v34  ;;  %v839_v36 = vadd.f32 1e-05, %v837_v35 }
 0x66a   :  { %1590 = vrsqrt.f32 %v839_v36 }
 0x672   :  { %v1589_v37 = vpop.eup %1588 }
 0x673   :  { %v842_v39 = vmul.f32 %v1589_v37, %v2040_v16 }
 0x674   :  { %v1591_v40 = vpop.eup %1590 }
 0x675   :  { %v843_v41 = vmul.f32 %v1591_v40, %v2042_v2  ;;  %v850_v42 = vmul.f32 %v1279_v38, %v842_v39 }
 0x677   :  { %v851_v44 = vmul.f32 %v1279_v38, %v843_v41  ;;  %v858_v45 = vadd.f32 %v1280_v43, %v850_v42 }
 0x679   :  { %v859_v46 = vadd.f32 %v1280_v43, %v851_v44 }
 0x67b   :  { %v860_v47 = vpack.c.bf16 %v859_v46, %v858_v45 }
 0x67d   :  { %990 = vmatmul.mubr.bf16.vlgmr.msra.gmra.mrb[20].mxu1 %v860_v47 }
 0x750   :  { %v991_v52 = vpop.f32.mrb[20].mxu1 }
 0x751   :  { %v993_v53 = vpop.f32.mrb[21].mxu1  ;;  %v1000_v0 = vmax.f32 %v991_v52, 0.0 }
 0x752   :  { %v995_v54 = vpop.f32.mrb[22].mxu1  ;;  %v1001_v57 = vmax.f32 %v993_v53, 0.0 }
 0x753   :  { %v1002_v55 = vmax.f32 %v995_v54, 0.0  ;;  %v997_v56 = vpop.f32.mrb[23].mxu1 }
 0x754   :  { %v1003_v58 = vmax.f32 %v997_v56, 0.0 }
 0x755   :  { %v1004_v59 = vpack.c.bf16 %v1002_v55, %v1000_v0 }
 0x756   :  { %v1005_v60 = vpack.c.bf16 %v1003_v58, %v1001_v57 }
 0x758   :  { %1166 = vmatprep.mubr.bf16.mxu0 %v1005_v60 }
 0x759   :  { %1167 = vmatmul.mubr.bf16.vlgmr.msra.gmra.mrb[12].mxu0 %v1004_v59 }
 0x82c   :  { %v1380_v61 = vpop.f32.mrb[12].mxu0 }
 0x82d   :  { %v1381_v62 = vpop.f32.mrb[13].mxu0 }
 0x82e   :  { %v1382_v63 = vadd.f32 %v1381_v62, %v1380_v61  ;;  %v1383_v16 = vpop.f32.mrb[14].mxu0 }
 0x82f   :  { %v1384_v1 = vpop.f32.mrb[15].mxu0 }
 0x830   :  { %v1385_v2 = vadd.f32 %v1384_v1, %v1383_v16  ;;  %v1175_v3 = vadd.f32 %v1382_v63, %v858_v45 }
 0x832   :  { %1179 = vadd.xlane.f32.xlu0 %v1175_v3  ;;  %v1176_v4 = vadd.f32 %v1385_v2, %v859_v46 }
 0x834   :  { %1181 = vadd.xlane.f32.xlu1 %v1176_v4 }
 0x8bf   :  { %v1180_v5 = vpop.xlane.xlu0 %1179 }
 0x8c0   :  { %v1183_v6 = vmul.f32 0.0078125, %v1180_v5 }
 0x8c1   :  { %v1182_v7 = vpop.xlane.xlu1 %1181 }
 0x8c2   :  { %v1185_v8 = vsub.f32 %v1175_v3, %v1183_v6  ;;  %v1184_v9 = vmul.f32 0.0078125, %v1182_v7 }
 0x8c4   :  { %v1186_v10 = vsub.f32 %v1176_v4, %v1184_v9  ;;  %v1187_v11 = vmul.f32 %v1185_v8, %v1185_v8 }
 0x8c6   :  { %1189 = vadd.xlane.f32.xlu0 %v1187_v11  ;;  %v1188_v12 = vmul.f32 %v1186_v10, %v1186_v10 }
 0x8c8   :  { %1191 = vadd.xlane.f32.xlu1 %v1188_v12 }
 0x953   :  { %v1190_v13 = vpop.xlane.xlu0 %1189 }
 0x954   :  { %v1193_v14 = vmul.f32 0.0078125, %v1190_v13 }
 0x955   :  { %v1192_v15 = vpop.xlane.xlu1 %1191 }
 0x956   :  { %v1195_v17 = vadd.f32 1e-05, %v1193_v14  ;;  %v1194_v18 = vmul.f32 0.0078125, %v1192_v15 }
 0x958   :  { %1592 = vrsqrt.f32 %v1195_v17  ;;  %v1196_v19 = vadd.f32 1e-05, %v1194_v18 }
 0x95a   :  { %1594 = vrsqrt.f32 %v1196_v19 }
 0x962   :  { %v1593_v20 = vpop.eup %1592 }
 0x963   :  { %v1199_v22 = vmul.f32 %v1593_v20, %v1185_v8 }
 0x964   :  { %v1595_v23 = vpop.eup %1594 }
 0x965   :  { %v1200_v24 = vmul.f32 %v1595_v23, %v1186_v10  ;;  %v1207_v25 = vmul.f32 %v1313_v21, %v1199_v22 }
 0x967   :  { %v1208_v27 = vmul.f32 %v1313_v21, %v1200_v24  ;;  %v1215_v28 = vadd.f32 %v1314_v26, %v1207_v25 }
 0x969   :  { %v1216_v29 = vadd.f32 %v1314_v26, %v1208_v27 }
 0x96b   :  { %v1318_v30 = vpack.c.bf16 %v1216_v29, %v1215_v28 }
 0x96d   :  { %1319 = vst [vmem:[#allocation14] sm:$0xff] %v1318_v30  }
 0x96e   :  { %1761 = shalt.err (!%p1758_p4)
}
 0x96f   :  { %s1762_s22 = scalar_lea.hbm %s2089_s12, 128 }
 0x970   :  { %p1763_p5 = scmp.ne.s32.totalorder %s2089_s12, %s1762_s22  ;;  %p1766_p6 = scmp.lt.u32.totalorder %s1762_s22, %s2089_s12 }
 0x972   :  { %p1768_p7 = pnand %p1766_p6, %p1763_p5 }
 0x974   :  { %1771 = shalt.err (!%p1768_p7)
}
 0x975   :  { %1232 = dma.vmem_to_hbm [thread:$0]  %s1227_s23, 128, %s2089_s12, [#allocation4], %s1784_s15, %s1784_s15, %s1785_s16  }
 0x976   :  { %1780 = dma.done.wait [#allocation4], 128  }
 0x977   :  { %1781 = vsyncadd [#allocation4], 4294967168 }
 0x978   :  { %1236 = vsyncpa [#allocation3], 1 }
 0x979   :  { %1237 = vsyncpa [#allocation6], 1 }
 0x97a   :  { %1238 = vsyncpa [#allocation9], 1 }
 0x97b   :  { %1239 = vsyncpa [#allocation12], 1 }
 0x97c   :  { %1240 = vsyncpa [#allocation4], 1 }

</bundles_post_ra>
